<compile_context>
chip_gen: v5e
topology: v5e:2x2
jax: 0.10.0
libtpu: 0.0.40
codegen_flags: <defaults>
</compile_context>

<pallas_src>
import jax
import jax.numpy as jnp
from jax.experimental import pallas as pl
from jax.experimental.pallas import tpu as pltpu


# -----------------------------------------------------------------------------
# Fused kernel: ARNN forward (MLP, mean + softplus-var heads) + temperature**2
# -----------------------------------------------------------------------------
def _fused_arnn_temp_kernel(x_ref, xr_ref,
                            w1a_ref, w1b_ref, b1_ref,
                            w2_ref, b2_ref,
                            wh_ref, bh_ref,
                            t2_ref,
                            mean_ref, var_ref):
    # Layer 1: split-weight dot (avoids host-side concat of the two windows).
    h1 = jnp.tanh(
        jnp.dot(x_ref[...], w1a_ref[...], preferred_element_type=jnp.float32)
        + jnp.dot(xr_ref[...], w1b_ref[...], preferred_element_type=jnp.float32)
        + b1_ref[...])
    # Layer 2
    h2 = jnp.tanh(
        jnp.dot(h1, w2_ref[...], preferred_element_type=jnp.float32)
        + b2_ref[...])
    # Fused mean/var head: one (H2, 2N) matmul, split statically.
    head = jnp.dot(h2, wh_ref[...], preferred_element_type=jnp.float32) + bh_ref[...]
    n = mean_ref.shape[-1]
    mean_ref[...] = head[:, :n]
    # Variance head is strictly positive; temperature scaling fused in here.
    var_ref[...] = jax.nn.softplus(head[:, n:]) * t2_ref[...]


# -----------------------------------------------------------------------------
# Wrapper
# -----------------------------------------------------------------------------
def temperature_scaling_forward(x, x_rec, params, temperature):
    """
    Equivalent of TemperatureScaling(model, temperature)(x, x_rec).

    x      : (B, input_channels, window_size)   f32
    x_rec  : (B, pred_size, rnn_window)         f32
    returns: mean (B, pred_size, forecast), var (B, pred_size, forecast)
    """
    B, C, W = x.shape
    _, P, RW = x_rec.shape
    F = params["forecast"]
    N = P * F

    # Flatten the two windows (contiguous-last-dim reshapes: layout no-ops).
    x_flat = x.reshape(B, C * W)
    xr_flat = x_rec.reshape(B, P * RW)

    # Host-side (trace-time) weight prep: split layer-1 weight, fuse the heads.
    w1 = params["w1"]
    w1a, w1b = w1[: C * W, :], w1[C * W:, :]
    wh = jnp.concatenate([params["wm"], params["wv"]], axis=1)   # (H2, 2N)
    bh = jnp.concatenate([params["bm"], params["bv"]], axis=1)   # (1, 2N)

    # temperature**2 expanded to channel-major (1, N) = (1, P*F) layout,
    # i.e. each per-channel factor repeated F times.
    t2 = jnp.repeat(jnp.square(temperature.astype(jnp.float32)), F).reshape(1, N)

    vmem = pl.BlockSpec(memory_space=pltpu.MemorySpace.VMEM)
    ins = (x_flat, xr_flat, w1a, w1b, params["b1"],
           params["w2"], params["b2"], wh, bh, t2)

    mean_flat, var_flat = pl.pallas_call(
        _fused_arnn_temp_kernel,
        in_specs=[vmem] * len(ins),
        out_specs=[vmem, vmem],
        out_shape=[jax.ShapeDtypeStruct((B, N), jnp.float32),
                   jax.ShapeDtypeStruct((B, N), jnp.float32)],
    )(*ins)

    return mean_flat.reshape(B, P, F), var_flat.reshape(B, P, F)


# -----------------------------------------------------------------------------
# Pure-JAX reference (for a correctness check)
# -----------------------------------------------------------------------------
def _reference(x, x_rec, params, temperature):
    B, C, W = x.shape
    _, P, RW = x_rec.shape
    F = params["forecast"]
    xf = jnp.concatenate([x.reshape(B, C * W), x_rec.reshape(B, P * RW)], axis=1)
    h1 = jnp.tanh(xf @ params["w1"] + params["b1"])
    h2 = jnp.tanh(h1 @ params["w2"] + params["b2"])
    mean = (h2 @ params["wm"] + params["bm"]).reshape(B, P, F)
    var = jax.nn.softplus(h2 @ params["wv"] + params["bv"]).reshape(B, P, F)
    var = var * jnp.square(temperature)[None, :, None]
    return mean, var


# -----------------------------------------------------------------------------
# Main
# -----------------------------------------------------------------------------
if __name__ == "__main__":
    # Model config from the docstring example:
    # DensityEstimationARNN(2, 1, 10, 10, [16, 8]), temps = [0.5]
    B, C, W = 32, 2, 10          # batch, input_channels, window_size
    P, RW, F = 1, 10, 1          # pred_size, rnn_window, forecast
    H1, H2 = 16, 8               # hidden layers
    D = C * W + P * RW           # flattened feature dim
    N = P * F

    key = jax.random.PRNGKey(0)
    kx, kr, k1, k2, k3, k4 = jax.random.split(key, 6)

    x = jax.random.normal(kx, (B, C, W), dtype=jnp.float32)
    x_rec = jax.random.normal(kr, (B, P, RW), dtype=jnp.float32)
    temperature = jnp.array([0.5], dtype=jnp.float32)   # shape (pred_size,)

    params = {
        "forecast": F,
        "w1": 0.1 * jax.random.normal(k1, (D, H1), dtype=jnp.float32),
        "b1": jnp.zeros((1, H1), dtype=jnp.float32),
        "w2": 0.1 * jax.random.normal(k2, (H1, H2), dtype=jnp.float32),
        "b2": jnp.zeros((1, H2), dtype=jnp.float32),
        "wm": 0.1 * jax.random.normal(k3, (H2, N), dtype=jnp.float32),
        "bm": jnp.zeros((1, N), dtype=jnp.float32),
        "wv": 0.1 * jax.random.normal(k4, (H2, N), dtype=jnp.float32),
        "bv": jnp.zeros((1, N), dtype=jnp.float32),
    }

    mean, var = temperature_scaling_forward(x, x_rec, params, temperature)
    jax.block_until_ready((mean, var))

    mean_ref, var_ref = _reference(x, x_rec, params, temperature)
    assert mean.shape == (B, P, F) and var.shape == (B, P, F)
    assert jnp.allclose(mean, mean_ref, atol=1e-5, rtol=1e-4)
    assert jnp.allclose(var, var_ref, atol=1e-5, rtol=1e-4)

    # TODO(synk): prediction()/RNN precomputed-hidden-state paths are a
    # dataloader-driven host loop with no standalone kernel equivalent.

    print("KERNEL_OK")
</pallas_src>

<mosaic_0001>
module attributes {stable_mosaic.version = 11 : i64} {
  func.func @_fused_arnn_temp_kernel(%arg0: memref<32x20xf32, #tpu.memory_space<vmem>>, %arg1: memref<32x10xf32, #tpu.memory_space<vmem>>, %arg2: memref<20x16xf32, #tpu.memory_space<vmem>>, %arg3: memref<10x16xf32, #tpu.memory_space<vmem>>, %arg4: memref<1x16xf32, #tpu.memory_space<vmem>>, %arg5: memref<16x8xf32, #tpu.memory_space<vmem>>, %arg6: memref<1x8xf32, #tpu.memory_space<vmem>>, %arg7: memref<8x2xf32, #tpu.memory_space<vmem>>, %arg8: memref<1x2xf32, #tpu.memory_space<vmem>>, %arg9: memref<1x1xf32, #tpu.memory_space<vmem>>, %arg10: memref<32x1xf32, #tpu.memory_space<vmem>>, %arg11: memref<32x1xf32, #tpu.memory_space<vmem>>) attributes {dimension_semantics = [], scalar_prefetch = 0 : i64, scratch_operands = 0 : i64, tpu.core_type = #tpu.core_type<tc>} {
    %c0 = arith.constant 0 : index
    %c0_0 = arith.constant 0 : index
    %0 = vector.load %arg0[%c0, %c0_0] : memref<32x20xf32, #tpu.memory_space<vmem>>, vector<32x20xf32>
    %c0_1 = arith.constant 0 : index
    %c0_2 = arith.constant 0 : index
    %1 = vector.load %arg2[%c0_1, %c0_2] : memref<20x16xf32, #tpu.memory_space<vmem>>, vector<20x16xf32>
    %cst = arith.constant dense<0.000000e+00> : vector<32x16xf32>
    %2 = tpu.matmul %0, %1, %cst {dimension_numbers = #tpu.dot_dimension_numbers<[1], [0], [0], [1], [0, 0, 1, 1], [], []>} : vector<32x20xf32>, vector<20x16xf32>, vector<32x16xf32> -> vector<32x16xf32>
    %c0_3 = arith.constant 0 : index
    %c0_4 = arith.constant 0 : index
    %3 = vector.load %arg1[%c0_3, %c0_4] : memref<32x10xf32, #tpu.memory_space<vmem>>, vector<32x10xf32>
    %c0_5 = arith.constant 0 : index
    %c0_6 = arith.constant 0 : index
    %4 = vector.load %arg3[%c0_5, %c0_6] : memref<10x16xf32, #tpu.memory_space<vmem>>, vector<10x16xf32>
    %cst_7 = arith.constant dense<0.000000e+00> : vector<32x16xf32>
    %5 = tpu.matmul %3, %4, %cst_7 {dimension_numbers = #tpu.dot_dimension_numbers<[1], [0], [0], [1], [0, 0, 1, 1], [], []>} : vector<32x10xf32>, vector<10x16xf32>, vector<32x16xf32> -> vector<32x16xf32>
    %6 = arith.addf %2, %5 : vector<32x16xf32>
    %c0_8 = arith.constant 0 : index
    %c0_9 = arith.constant 0 : index
    %7 = vector.load %arg4[%c0_8, %c0_9] : memref<1x16xf32, #tpu.memory_space<vmem>>, vector<1x16xf32>
    %8 = vector.broadcast %7 : vector<1x16xf32> to vector<32x16xf32>
    %9 = arith.addf %6, %8 : vector<32x16xf32>
    %10 = math.tanh %9 : vector<32x16xf32>
    %c0_10 = arith.constant 0 : index
    %c0_11 = arith.constant 0 : index
    %11 = vector.load %arg5[%c0_10, %c0_11] : memref<16x8xf32, #tpu.memory_space<vmem>>, vector<16x8xf32>
    %cst_12 = arith.constant dense<0.000000e+00> : vector<32x8xf32>
    %12 = tpu.matmul %10, %11, %cst_12 {dimension_numbers = #tpu.dot_dimension_numbers<[1], [0], [0], [1], [0, 0, 1, 1], [], []>} : vector<32x16xf32>, vector<16x8xf32>, vector<32x8xf32> -> vector<32x8xf32>
    %c0_13 = arith.constant 0 : index
    %c0_14 = arith.constant 0 : index
    %13 = vector.load %arg6[%c0_13, %c0_14] : memref<1x8xf32, #tpu.memory_space<vmem>>, vector<1x8xf32>
    %14 = vector.broadcast %13 : vector<1x8xf32> to vector<32x8xf32>
    %15 = arith.addf %12, %14 : vector<32x8xf32>
    %16 = math.tanh %15 : vector<32x8xf32>
    %c0_15 = arith.constant 0 : index
    %c0_16 = arith.constant 0 : index
    %17 = vector.load %arg7[%c0_15, %c0_16] : memref<8x2xf32, #tpu.memory_space<vmem>>, vector<8x2xf32>
    %cst_17 = arith.constant dense<0.000000e+00> : vector<32x2xf32>
    %18 = tpu.matmul %16, %17, %cst_17 {dimension_numbers = #tpu.dot_dimension_numbers<[1], [0], [0], [1], [0, 0, 1, 1], [], []>} : vector<32x8xf32>, vector<8x2xf32>, vector<32x2xf32> -> vector<32x2xf32>
    %c0_18 = arith.constant 0 : index
    %c0_19 = arith.constant 0 : index
    %19 = vector.load %arg8[%c0_18, %c0_19] : memref<1x2xf32, #tpu.memory_space<vmem>>, vector<1x2xf32>
    %20 = vector.broadcast %19 : vector<1x2xf32> to vector<32x2xf32>
    %21 = arith.addf %18, %20 : vector<32x2xf32>
    %22 = vector.extract_strided_slice %21 {offsets = [0, 0], sizes = [32, 1], strides = [1, 1]} : vector<32x2xf32> to vector<32x1xf32>
    %c0_20 = arith.constant 0 : index
    %c0_21 = arith.constant 0 : index
    %23 = vector.load %arg10[%c0_20, %c0_21] : memref<32x1xf32, #tpu.memory_space<vmem>>, vector<32x1xf32>
    tpu.vector_store %arg10[%c0_20, %c0_21], %22 {strides = array<i32>} : memref<32x1xf32, #tpu.memory_space<vmem>>, vector<32x1xf32>,
    %24 = vector.extract_strided_slice %21 {offsets = [0, 1], sizes = [32, 1], strides = [1, 1]} : vector<32x2xf32> to vector<32x1xf32>
    %cst_22 = arith.constant 0.000000e+00 : f32
    %25 = vector.broadcast %cst_22 : f32 to vector<32x1xf32>
    %26 = arith.maximumf %24, %25 : vector<32x1xf32>
    %27 = vector.broadcast %cst_22 : f32 to vector<32x1xf32>
    %28 = arith.subf %24, %27 : vector<32x1xf32>
    %29 = arith.cmpf one, %28, %28 : vector<32x1xf32>
    %30 = vector.broadcast %cst_22 : f32 to vector<32x1xf32>
    %31 = arith.addf %24, %30 : vector<32x1xf32>
    %32 = math.absf %28 : vector<32x1xf32>
    %cst_23 = arith.constant 0.000000e+00 : f32
    %33 = vector.broadcast %cst_23 : f32 to vector<32x1xf32>
    %34 = arith.subf %33, %32 : vector<32x1xf32>
    %35 = math.exp %34 : vector<32x1xf32>
    %36 = math.log1p %35 : vector<32x1xf32>
    %37 = arith.addf %26, %36 : vector<32x1xf32>
    %38 = arith.select %29, %31, %37 : vector<32x1xi1>, vector<32x1xf32>
    %c0_24 = arith.constant 0 : index
    %c0_25 = arith.constant 0 : index
    %39 = vector.load %arg9[%c0_24, %c0_25] : memref<1x1xf32, #tpu.memory_space<vmem>>, vector<1x1xf32>
    %40 = vector.broadcast %39 : vector<1x1xf32> to vector<32x1xf32>
    %41 = arith.mulf %38, %40 : vector<32x1xf32>
    %c0_26 = arith.constant 0 : index
    %c0_27 = arith.constant 0 : index
    %42 = vector.load %arg11[%c0_26, %c0_27] : memref<32x1xf32, #tpu.memory_space<vmem>>, vector<32x1xf32>
    tpu.vector_store %arg11[%c0_26, %c0_27], %41 {strides = array<i32>} : memref<32x1xf32, #tpu.memory_space<vmem>>, vector<32x1xf32>,
    return
  }
}

</mosaic_0001>

<bundles_post_ra>
// kernel: tpu_custom_call.1
= control target key start
LH: loop header
LB: loop body
LE: loop exit
PB: predicated region body
PF: predicated region fallthrough
CT: control target
= control target key end

     0   :  { %vm111_vm0 = vcmask 1043456   ;;  %vm65_vm1 = vcmask 1041408   ;;  %vm52_vm2 = vcmask 80896   ;;  %vm98_vm3 = vcmask 162816   ;;  %s427_s16 = smov 127   ;;  %s616_s2 = inlined_call_operand.vmem [shape: f32[20,16], index: 2, kind: input, shape index: {}]   ;;  %s617_s3 = inlined_call_operand.vmem [shape: f32[10,16], index: 3, kind: input, shape index: {}]   ;;  %s618_s1 = inlined_call_operand.vmem [shape: f32[32,10], index: 1, kind: input, shape index: {}]   ;;  %s619_s0 = inlined_call_operand.vmem [shape: f32[32,20], index: 0, kind: input, shape index: {}]   ;;  %s620_s4 = inlined_call_operand.vmem [shape: f32[1,16], index: 4, kind: input, shape index: {}]   ;;  %s621_s6 = inlined_call_operand.vmem [shape: f32[1,8], index: 6, kind: input, shape index: {}]   ;;  %s622_s5 = inlined_call_operand.vmem [shape: f32[16,8], index: 5, kind: input, shape index: {}]   ;;  %s623_s8 = inlined_call_operand.vmem [shape: f32[1,2], index: 8, kind: input, shape index: {}]   ;;  %s624_s7 = inlined_call_operand.vmem [shape: f32[8,2], index: 7, kind: input, shape index: {}]   ;;  %s625_s9 = inlined_call_operand.<no memory space> [shape: f32[1,1], index: 9, kind: input, shape index: {}]   ;;  %s626_s10 = inlined_call_operand.vmem [shape: f32[32,1], index: 10, kind: output, shape index: {0}]   ;;  %s627_s11 = inlined_call_operand.vmem [shape: f32[32,1], index: 11, kind: output, shape index: {1}]  }
   0x1   :  { %v45_v0 = vld [vmem:[%s616_s2 + $0x10] sm:$0xf]  ;;  %v51_v1 = vld [vmem:[%s617_s3 + $0x8] sm:$0x3]  ;;  %v50_v3 = vld [vmem:[%s617_s3] sm:$0xff]  ;;  %vm162_vm4 = vcmask 130048   ;;  %v17_v40 = vstv %s625_s9 }
   0x2   :  { %v44_v2 = vld [vmem:[%s616_s2 + $0x8] sm:$0xff]  ;;  %375 = vmatpush.msk.msra.mxu1 %vm111_vm0, %v45_v0  ;;  %370 = vmatpush.msk.msra.mxu0 %vm65_vm1, %v51_v1  ;;  %v46_v4 = vld [vmem:[%s618_s1] sm:$0xff]  ;;  %v48_v9 = vld [vmem:[%s618_s1 + $0x10] sm:$0xff]  ;;  %18 = vst [vmem:[#allocation2] sm:$0x1] %v17_v40  ;;  %vm213_vm5 = vcmask 64512  }
   0x3   :  { %v43_v5 = vld [vmem:[%s616_s2] sm:$0xff]  ;;  %v47_v7 = vld [vmem:[%s618_s1 + $0x8] sm:$0xff]  ;;  %v41_v10 = vld [vmem:[%s619_s0 + $0x10] sm:$0xff]  ;;  %vm255_vm6 = vcmask 7168  }
   0x4   :  { %129 = vmatpush.msra.mxu1 %v44_v2  ;;  %84 = vmatpush.msra.mxu0 %v50_v3  ;;  %v39_v6 = vld [vmem:[%s619_s0] sm:$0xff]  ;;  %v40_v8 = vld [vmem:[%s619_s0 + $0x8] sm:$0xff]  ;;  %v49_v11 = vld [vmem:[%s618_s1 + $0x18] sm:$0xff] }
   0x5   :  { %371 = vmatmul.msk.f32.vlgmr.msra.gmra.mxu0 %vm52_vm2, %v46_v4  ;;  %v42_v12 = vld [vmem:[%s619_s0 + $0x18] sm:$0xff]  ;;  %v157_v13 = vld [vmem:[%s622_s5 + $0x8] sm:$0xff]  ;;  %v156_v14 = vld [vmem:[%s622_s5] sm:$0xff] }
   0x6   :  { %130 = vmatpush.msra.mxu1 %v43_v5  ;;  %189 = vmatpush.msra.mxu2 %v157_v13  ;;  %v390_v16 = vld [vmem:[%s620_s4] ss:$0 sm:$0xff] }
   0x7   :  { %376 = vmatmul.msk.f32.vlgmr.msra.gmra.mxu1 %vm98_vm3, %v39_v6  ;;  %v208_v36 = vld [vmem:[%s624_s7] sm:$0xff]  ;;  %s426_s7 = smov 1  }
   0x8   :  { %190 = vmatpush.msra.mxu2 %v156_v14  ;;  %241 = vmatpush.msra.mxu3 %v208_v36  ;;  %v391_v37 = vld [vmem:[%s621_s6] ss:$0 sm:$0xff] }
   0x9   :  { %v392_v44 = vld [vmem:[#allocation2] ss:$0 sm:$0xff] }
   0xa   :  { %335 = vrot.lane.b32.xlu0 %v392_v44, %s426_s7  ;;  %v393_v52 = vld [vmem:[%s623_s8] ss:$0 sm:$0xff] }
   0xd   :  { %372 = vmatmul.msk.f32.gmra.mxu0 %vm52_vm2, %v47_v7 }
   0xf   :  { %377 = vmatmul.msk.f32.gmra.mxu1 %vm98_vm3, %v40_v8 }
  0x15   :  { %373 = vmatmul.msk.f32.gmra.mxu0 %vm52_vm2, %v48_v9 }
  0x17   :  { %378 = vmatmul.msk.f32.gmra.mxu1 %vm98_vm3, %v41_v10 }
  0x1d   :  { %374 = vmatmul.msk.f32.gmra.mxu0 %vm52_vm2, %v49_v11 }
  0x1f   :  { %379 = vmatmul.msk.f32.gmra.mxu1 %vm98_vm3, %v42_v12 }
  0x82   :  { %v86_v15 = vpop.f32.mrf.mxu0 }
  0x84   :  { %v132_v17 = vpop.f32.mrf.mxu1 }
  0x85   :  { %v133_v18 = vadd.f32 %v132_v17, %v86_v15 }
  0x87   :  { %v148_v19 = vadd.f32 %v390_v16, %v133_v18 }
  0x89   :  { %394 = vtanh.f32 %v148_v19 }
  0x8a   :  { %v89_v20 = vpop.f32.mrf.mxu0 }
  0x8c   :  { %v135_v21 = vpop.f32.mrf.mxu1 }
  0x8d   :  { %v136_v22 = vadd.f32 %v135_v21, %v89_v20  ;;  %v336_v20 = vpop.permute.xlu0 %335 }
  0x8f   :  { %v395_v23 = vpop.eup %394  ;;  %v149_v24 = vadd.f32 %v390_v16, %v136_v22 }
  0x90   :  { %380 = vmatmul.msk.f32.vlgmr.msra.gmra.mxu2 %vm162_vm4, %v395_v23 }
  0x91   :  { %396 = vtanh.f32 %v149_v24 }
  0x92   :  { %v92_v25 = vpop.f32.mrf.mxu0 }
  0x94   :  { %v138_v26 = vpop.f32.mrf.mxu1 }
  0x95   :  { %v139_v27 = vadd.f32 %v138_v26, %v92_v25 }
  0x97   :  { %v397_v28 = vpop.eup %396  ;;  %v150_v29 = vadd.f32 %v390_v16, %v139_v27 }
  0x98   :  { %381 = vmatmul.msk.f32.gmra.mxu2 %vm162_vm4, %v397_v28 }
  0x99   :  { %398 = vtanh.f32 %v150_v29 }
  0x9a   :  { %v95_v30 = vpop.f32.mrf.mxu0 }
  0x9c   :  { %v141_v31 = vpop.f32.mrf.mxu1 }
  0x9d   :  { %v142_v32 = vadd.f32 %v141_v31, %v95_v30 }
  0x9f   :  { %v399_v33 = vpop.eup %398  ;;  %v151_v34 = vadd.f32 %v390_v16, %v142_v32 }
  0xa0   :  { %382 = vmatmul.msk.f32.gmra.mxu2 %vm162_vm4, %v399_v33 }
  0xa1   :  { %400 = vtanh.f32 %v151_v34 }
  0xa7   :  { %v401_v35 = vpop.eup %400 }
  0xa8   :  { %383 = vmatmul.msk.f32.gmra.mxu2 %vm162_vm4, %v401_v35 }
 0x113   :  { %v192_v38 = vpop.f32.mrf.mxu2 }
 0x114   :  { %v193_v39 = vadd.f32 %v391_v37, %v192_v38 }
 0x116   :  { %402 = vtanh.f32 %v193_v39 }
 0x11b   :  { %v195_v41 = vpop.f32.mrf.mxu2 }
 0x11c   :  { %v403_v42 = vpop.eup %402  ;;  %v196_v43 = vadd.f32 %v391_v37, %v195_v41 }
 0x11d   :  { %384 = vmatmul.msk.f32.vlgmr.msra.gmra.mxu3 %vm213_vm5, %v403_v42 }
 0x11e   :  { %404 = vtanh.f32 %v196_v43 }
 0x123   :  { %v198_v45 = vpop.f32.mrf.mxu2 }
 0x124   :  { %v405_v46 = vpop.eup %404  ;;  %v199_v47 = vadd.f32 %v391_v37, %v198_v45 }
 0x125   :  { %385 = vmatmul.msk.f32.gmra.mxu3 %vm213_vm5, %v405_v46 }
 0x126   :  { %406 = vtanh.f32 %v199_v47 }
 0x12b   :  { %v201_v48 = vpop.f32.mrf.mxu2 }
 0x12c   :  { %v407_v49 = vpop.eup %406  ;;  %v202_v50 = vadd.f32 %v391_v37, %v201_v48 }
 0x12d   :  { %386 = vmatmul.msk.f32.gmra.mxu3 %vm213_vm5, %v407_v49 }
 0x12e   :  { %408 = vtanh.f32 %v202_v50 }
 0x134   :  { %v409_v51 = vpop.eup %408 }
 0x135   :  { %387 = vmatmul.msk.f32.gmra.mxu3 %vm213_vm5, %v409_v51 }
 0x1a0   :  { %v243_v53 = vpop.f32.mrf.mxu3 }
 0x1a1   :  { %v244_v54 = vadd.f32 %v393_v52, %v243_v53 }
 0x1a3   :  { %256 = vst.msk [vmem:[%s626_s10] sm:$0xff] %vm255_vm6, %v244_v54  ;;  %v272_v55 = vand.u32 2147483647, %v244_v54  ;;  %v260_v17 = vmax.f32 %v244_v54, 0.0  ;;  %vm264_vm8 = vcmp.ne.f32.partialorder %v244_v54, %v244_v54 }
 0x1a5   :  { %v276_v56 = vsub.f32 0.0, %v272_v55 }
 0x1a7   :  { %v280_v57 = vmul.f32 1.442695, %v276_v56 }
 0x1a8   :  { %v246_v58 = vpop.f32.mrf.mxu3 }
 0x1a9   :  { %410 = vpow2.f32 %v280_v57  ;;  %v247_v59 = vadd.f32 %v393_v52, %v246_v58 }
 0x1ab   :  { %257 = vst.msk [vmem:[%s626_s10 + $0x8] sm:$0xff] %vm255_vm6, %v247_v59  ;;  %v273_v60 = vand.u32 2147483647, %v247_v59  ;;  %v261_v34 = vmax.f32 %v247_v59, 0.0  ;;  %vm265_vm10 = vcmp.ne.f32.partialorder %v247_v59, %v247_v59 }
 0x1ad   :  { %v277_v61 = vsub.f32 0.0, %v273_v60 }
 0x1af   :  { %v411_v62 = vpop.eup %410  ;;  %v282_v63 = vmul.f32 1.442695, %v277_v61 }
 0x1b0   :  { %v249_v0 = vpop.f32.mrf.mxu3  ;;  %v288_v1 = vadd.f32 1.0, %v411_v62  ;;  %v291_v2 = vmul.f32 -0.5, %v411_v62  ;;  %v294_v7 = vand.u32 2147483647, %v411_v62 }
 0x1b1   :  { %412 = vpow2.f32 %v282_v63  ;;  %v572_v3 = vadd.f32 %v393_v52, %v249_v0 }
 0x1b2   :  { %414 = vlog2.f32 %v288_v1  ;;  %v292_v5 = vadd.f32 1.0, %v291_v2  ;;  %vm295_vm7 = vcmp.lt.f32.partialorder %v294_v7, 0.0004427343 }
 0x1b3   :  { %258 = vst.msk [vmem:[%s626_s10 + $0x10] sm:$0xff] %vm255_vm6, %v572_v3  ;;  %v274_v4 = vand.u32 2147483647, %v572_v3  ;;  %v262_v47 = vmax.f32 %v572_v3, 0.0  ;;  %vm266_vm12 = vcmp.ne.f32.partialorder %v572_v3, %v572_v3 }
 0x1b4   :  { %v293_v12 = vmul.f32 %v411_v62, %v292_v5 }
 0x1b5   :  { %v278_v6 = vsub.f32 0.0, %v274_v4 }
 0x1b7   :  { %v413_v8 = vpop.eup %412  ;;  %v284_v9 = vmul.f32 1.442695, %v278_v6 }
 0x1b8   :  { %v415_v10 = vpop.eup %414  ;;  %v252_v11 = vpop.f32.mrf.mxu3  ;;  %v297_v13 = vadd.f32 1.0, %v413_v8  ;;  %v300_v16 = vmul.f32 -0.5, %v413_v8  ;;  %v303_v25 = vand.u32 2147483647, %v413_v8 }
 0x1b9   :  { %416 = vpow2.f32 %v284_v9  ;;  %v580_v14 = vadd.f32 %v393_v52, %v252_v11  ;;  %v290_v15 = vmul.f32 0.6931472, %v415_v10 }
 0x1ba   :  { %418 = vlog2.f32 %v297_v13  ;;  %v301_v23 = vadd.f32 1.0, %v300_v16  ;;  %vm304_vm9 = vcmp.lt.f32.partialorder %v303_v25, 0.0004427343 }
 0x1bb   :  { %259 = vst.msk [vmem:[%s626_s10 + $0x18] sm:$0xff] %vm255_vm6, %v580_v14  ;;  %v275_v18 = vand.u32 2147483647, %v580_v14  ;;  %v296_v19 = vsel %vm295_vm7, %v293_v12, %v290_v15  ;;  %v263_v57 = vmax.f32 %v580_v14, 0.0  ;;  %vm267_vm14 = vcmp.ne.f32.partialorder %v580_v14, %v580_v14 }
 0x1bc   :  { %v324_v21 = vadd.f32 %v296_v19, %v260_v17  ;;  %v302_v32 = vmul.f32 %v413_v8, %v301_v23 }
 0x1bd   :  { %v279_v22 = vsub.f32 0.0, %v275_v18 }
 0x1be   :  { %v328_v24 = vsel %vm264_vm8, %v244_v54, %v324_v21 }
 0x1bf   :  { %v417_v26 = vpop.eup %416  ;;  %v286_v27 = vmul.f32 1.442695, %v279_v22  ;;  %v338_v28 = vmul.f32 %v336_v20, %v328_v24 }
 0x1c0   :  { %v419_v29 = vpop.eup %418  ;;  %v306_v30 = vadd.f32 1.0, %v417_v26  ;;  %v309_v33 = vmul.f32 -0.5, %v417_v26  ;;  %v312_v39 = vand.u32 2147483647, %v417_v26 }
 0x1c1   :  { %420 = vpow2.f32 %v286_v27  ;;  %346 = vrot.lane.b32.xlu0 %v338_v28, %s427_s16  ;;  %v299_v31 = vmul.f32 0.6931472, %v419_v29 }
 0x1c2   :  { %422 = vlog2.f32 %v306_v30  ;;  %v310_v37 = vadd.f32 1.0, %v309_v33  ;;  %vm313_vm11 = vcmp.lt.f32.partialorder %v312_v39, 0.0004427343 }
 0x1c3   :  { %v305_v35 = vsel %vm304_vm9, %v302_v32, %v299_v31 }
 0x1c4   :  { %v325_v36 = vadd.f32 %v305_v35, %v261_v34  ;;  %v311_v46 = vmul.f32 %v417_v26, %v310_v37 }
 0x1c6   :  { %v329_v38 = vsel %vm265_vm10, %v247_v59, %v325_v36 }
 0x1c7   :  { %v421_v40 = vpop.eup %420  ;;  %v339_v41 = vmul.f32 %v336_v20, %v329_v38 }
 0x1c8   :  { %v423_v42 = vpop.eup %422  ;;  %v315_v43 = vadd.f32 1.0, %v421_v40  ;;  %v318_v44 = vmul.f32 -0.5, %v421_v40  ;;  %v321_v51 = vand.u32 2147483647, %v421_v40 }
 0x1c9   :  { %348 = vrot.lane.b32.xlu1 %v339_v41, %s427_s16  ;;  %v308_v45 = vmul.f32 0.6931472, %v423_v42 }
 0x1ca   :  { %424 = vlog2.f32 %v315_v43  ;;  %v319_v49 = vadd.f32 1.0, %v318_v44  ;;  %vm322_vm13 = vcmp.lt.f32.partialorder %v321_v51, 0.0004427343 }
 0x1cb   :  { %v314_v48 = vsel %vm313_vm11, %v311_v46, %v308_v45 }
 0x1cc   :  { %v326_v50 = vadd.f32 %v314_v48, %v262_v47  ;;  %v320_v54 = vmul.f32 %v421_v40, %v319_v49 }
 0x1ce   :  { %v330_v52 = vsel %vm266_vm12, %v572_v3, %v326_v50 }
 0x1cf   :  { %v340_v53 = vmul.f32 %v336_v20, %v330_v52 }
 0x1d0   :  { %v425_v55 = vpop.eup %424 }
 0x1d1   :  { %350 = vrot.lane.b32.xlu1 %v340_v53, %s427_s16  ;;  %v317_v56 = vmul.f32 0.6931472, %v425_v55 }
 0x1d3   :  { %v323_v58 = vsel %vm322_vm13, %v320_v54, %v317_v56 }
 0x1d4   :  { %v327_v59 = vadd.f32 %v323_v58, %v263_v57 }
 0x1d6   :  { %v331_v60 = vsel %vm267_vm14, %v580_v14, %v327_v59 }
 0x1d7   :  { %v341_v61 = vmul.f32 %v336_v20, %v331_v60 }
 0x1d9   :  { %352 = vrot.lane.b32.xlu2 %v341_v61, %s427_s16 }
 0x233   :  { %v353_v62 = vpop.permute.xlu2 %352  ;;  %v347_v63 = vpop.permute.xlu0 %346 }
 0x234   :  { %361 = vst.msk [vmem:[%s627_s11 + $0x18] sm:$0xff] %vm255_vm6, %v353_v62 }
 0x235   :  { %358 = vst.msk [vmem:[%s627_s11] sm:$0xff] %vm255_vm6, %v347_v63 }
 0x23b   :  { %v349_v0 = vpop.permute.xlu1 %348 }
 0x23c   :  { %359 = vst.msk [vmem:[%s627_s11 + $0x8] sm:$0xff] %vm255_vm6, %v349_v0 }
 0x243   :  { %v351_v1 = vpop.permute.xlu1 %350 }
 0x244   :  { %360 = vst.msk [vmem:[%s627_s11 + $0x10] sm:$0xff] %vm255_vm6, %v351_v1 }

</bundles_post_ra>
